<compile_context>
chip_gen: v7x
topology: tpu7x:2x2x1
jax: 0.10.0
libtpu: 0.0.40
codegen_flags: <defaults>
</compile_context>

<pallas_src>
import math

import jax
import jax.numpy as jnp
from jax import lax
from jax.experimental import pallas as pl
from jax.experimental.pallas import tpu as pltpu


def _round_up(x, m):
    return (x + m - 1) // m * m


def ffnn_dual_kernel(cls_ref, feat_ref, w1h_ref, w1f_ref, b1_ref, w2_ref, b2_ref,
                     wc_ref, bc_ref, o_ref):
    """One batch tile of FFNNDual (eval mode: dropouts are identity).

    cls_ref : (tb, H)   f32   CLS hidden-state tile (pipelined)
    feat_ref: (tb, F)   f32   input_features tile (pipelined)
    w1h_ref : (H, H1)   bf16  first_layer weight rows for the CLS slab
    w1f_ref : (F, H1)   bf16  first_layer weight rows for the feature slab
    b1_ref  : (1, H1)   f32
    w2_ref  : (H1, H2)  bf16
    b2_ref  : (1, H2)   f32
    wc_ref  : (2, H2)   bf16  classifier weight (PyTorch (out, in) layout)
    bc_ref  : (2, 1)    f32   classifier bias (broadcast over the lane axis)
    o_ref   : (2, tb)   f32   logits^T (batch on the 128-lane axis -> dense stores)
    """
    # f32 -> bf16 cast happens in-register here (VPU), so HBM only sees the f32 input once.
    x_cls = cls_ref[...].astype(jnp.bfloat16)
    x_feat = feat_ref[...].astype(jnp.bfloat16)

    # first_layer + ReLU; concat([cls, feat]) @ W1 == cls @ W1_h + feat @ W1_f.
    # (dropout_1 == identity in eval mode)
    h1 = jnp.dot(x_cls, w1h_ref[...], preferred_element_type=jnp.float32)
    h1 = h1 + jnp.dot(x_feat, w1f_ref[...], preferred_element_type=jnp.float32)
    h1 = jnp.maximum(h1 + b1_ref[...], 0.0)

    # second_layer + ReLU  (dropout_2 == identity in eval mode)
    h2 = jnp.dot(h1.astype(jnp.bfloat16), w2_ref[...],
                 preferred_element_type=jnp.float32)
    h2 = jnp.maximum(h2 + b2_ref[...], 0.0)

    # classifier: contract H2 with wc as LHS -> (2, tb); batch stays on the lane axis so
    # the store is a full unmasked vst (no lane-sparse (tb, 2) result).
    logits_t = lax.dot_general(
        wc_ref[...], h2.astype(jnp.bfloat16),
        dimension_numbers=(((1,), (1,)), ((), ())),
        preferred_element_type=jnp.float32)                       # (2, tb)

    o_ref[...] = (logits_t + bc_ref[...]).astype(o_ref.dtype)


def _choose_batch_tiling(B, max_block_batch):
    """Pick (tile, padded_batch, n_steps).

    - tiles as big as max_block_batch (amortize per-step overhead),
    - >=2 steps once the batch is large enough (v7x megacore via "parallel" semantics),
    - tile ~= ceil(B / n_steps) so the last tile is mostly full for ragged batch sizes,
    - multi-step tiles are multiples of 128 so the (2, tb) logits^T store is lane-dense.
    """
    Bp8 = _round_up(max(B, 8), 8)
    n_steps = pl.cdiv(Bp8, max_block_batch)
    if n_steps == 1 and Bp8 >= 1024:
        n_steps = 2          # keep both v7x TensorCores busy on big batches
    if n_steps == 1:
        return Bp8, Bp8, 1
    tb = _round_up(pl.cdiv(Bp8, n_steps), 128)
    n_steps = pl.cdiv(Bp8, tb)
    return tb, tb * n_steps, n_steps


def ffnn_dual_pooled_forward(x_cls, x_feat, params, *, max_block_batch=2048):
    """Fused FFNNDual forward on pooled = concat(x_cls, x_feat), eval semantics.

    x_cls: (B, H) f32, x_feat: (B, F) f32  ->  logits (B, 2) f32.
    """
    B, H = x_cls.shape
    Bf, F = x_feat.shape
    assert B == Bf
    D = H + F
    w1 = params["w1"]
    assert w1.shape[0] == D
    H1 = w1.shape[1]
    H2 = params["w2"].shape[1]
    assert params["w2"].shape == (H1, H2)
    assert params["wc"].shape == (2, H2)

    # ---- batch tiling: big tiles, mostly-full last tile, >=2 parallel steps when large.
    tb, Bp, n_steps = _choose_batch_tiling(B, max_block_batch)

    if Bp != B:
        x_cls = jnp.pad(x_cls, ((0, Bp - B), (0, 0)))
        x_feat = jnp.pad(x_feat, ((0, Bp - B), (0, 0)))

    # one-time weight casts: bf16 operands for the MXU, f32 accumulation / bias / ReLU.
    w1_h = w1[:H].astype(jnp.bfloat16)
    w1_f = w1[H:].astype(jnp.bfloat16)
    w2 = params["w2"].astype(jnp.bfloat16)
    wc = params["wc"].astype(jnp.bfloat16)
    b1 = params["b1"].reshape(1, H1).astype(jnp.float32)
    b2 = params["b2"].reshape(1, H2).astype(jnp.float32)
    bc = params["bc"].reshape(2, 1).astype(jnp.float32)

    weight_bytes = (w1_h.size + w1_f.size + w2.size + wc.size) * 2 \
        + (b1.size + b2.size + bc.size) * 4

    # VMEM budget: double-buffered f32 x tiles + double-buffered f32 out tile
    # + single-buffered weights + f32 h1/h2 intermediates + compiler slack.
    vmem_bytes = (2 * tb * (H + F) * 4
                  + 2 * 2 * tb * 4
                  + tb * (H1 + H2) * 4
                  + weight_bytes
                  + (8 << 20))
    vmem_limit = int(min(max(vmem_bytes, 32 << 20), 64 << 20))   # v7x-safe cap

    flops = 2 * Bp * (D * H1 + H1 * H2 + 2 * H2)
    bytes_accessed = Bp * (H + F) * 4 + weight_bytes + Bp * 2 * 4
    cost = pl.CostEstimate(flops=flops, transcendentals=0,
                           bytes_accessed=bytes_accessed)

    one_buf = pl.Buffered(buffer_count=1)   # constant-index blocks: no second buffer

    logits_t = pl.pallas_call(
        ffnn_dual_kernel,
        out_shape=jax.ShapeDtypeStruct((2, Bp), jnp.float32),
        grid_spec=pltpu.PrefetchScalarGridSpec(
            num_scalar_prefetch=0,
            grid=(n_steps,),
            in_specs=[
                pl.BlockSpec((tb, H), lambda i: (i, 0)),           # CLS tile (pipelined)
                pl.BlockSpec((tb, F), lambda i: (i, 0)),           # feature tile (pipelined)
                pl.BlockSpec((H, H1), lambda i: (0, 0), pipeline_mode=one_buf),
                pl.BlockSpec((F, H1), lambda i: (0, 0), pipeline_mode=one_buf),
                pl.BlockSpec((1, H1), lambda i: (0, 0), pipeline_mode=one_buf),
                pl.BlockSpec((H1, H2), lambda i: (0, 0), pipeline_mode=one_buf),
                pl.BlockSpec((1, H2), lambda i: (0, 0), pipeline_mode=one_buf),
                pl.BlockSpec((2, H2), lambda i: (0, 0), pipeline_mode=one_buf),
                pl.BlockSpec((2, 1), lambda i: (0, 0), pipeline_mode=one_buf),
            ],
            out_specs=pl.BlockSpec((2, tb), lambda i: (0, i)),     # lane-dense logits^T
        ),
        compiler_params=pltpu.CompilerParams(
            dimension_semantics=("parallel",),
            vmem_limit_bytes=vmem_limit,
        ),
        cost_estimate=cost,
    )(x_cls, x_feat, w1_h, w1_f, b1, w2, b2, wc, bc)

    # wrapper-side layout plumbing (free): back to PyTorch's (B, 2) logits.
    return logits_t.T[:B]


def distilbert_dual_classifier_forward(hidden_state, input_features, ffnn_params,
                                       *, max_block_batch=2048):
    """Mirrors DistilBertDualClassifier.forward on the labels=None path.

    hidden_state: (B, S, H) — stand-in for the DistilBERT encoder output.
    input_features: (B, F)
    returns (logits,) with logits of shape (B, 2).
    """
    x_cls = hidden_state[:, 0]                            # CLS token (strided slice only;
    x_feat = input_features.astype(jnp.float32)           #  no pooled concat materialized)
    logits = ffnn_dual_pooled_forward(x_cls, x_feat, ffnn_params,
                                      max_block_batch=max_block_batch)
    # (the module also computes preds = sigmoid(logits); unused on the labels=None path)
    return (logits,)


def init_ffnn_params(key, input_size, hidden_size_1, hidden_size_2, num_labels=2):
    """nn.Linear-style U(-1/sqrt(fan_in), 1/sqrt(fan_in)) init, f32 master weights."""
    def linear_init(k, fan_in, fan_out, transposed):
        kw, kb = jax.random.split(k)
        bound = 1.0 / math.sqrt(fan_in)
        shape = (fan_in, fan_out) if transposed else (fan_out, fan_in)
        w = jax.random.uniform(kw, shape, jnp.float32, -bound, bound)
        b = jax.random.uniform(kb, (fan_out,), jnp.float32, -bound, bound)
        return w, b

    k1, k2, k3 = jax.random.split(key, 3)
    w1, b1 = linear_init(k1, input_size, hidden_size_1, True)   # stored (in, out)
    w2, b2 = linear_init(k2, hidden_size_1, hidden_size_2, True)
    wc, bc = linear_init(k3, hidden_size_2, num_labels, False)  # torch (out, in)
    return {"w1": w1, "b1": b1, "w2": w2, "b2": b2, "wc": wc, "bc": bc}


def ffnn_dual_reference(x_cls, x_feat, p):
    """Pure-JAX reference with the same bf16-MXU / f32-accumulate recipe as the kernel."""
    H = x_cls.shape[1]
    w1 = p["w1"].astype(jnp.bfloat16)
    w2 = p["w2"].astype(jnp.bfloat16)
    wc = p["wc"].astype(jnp.bfloat16)
    h1 = (jnp.dot(x_cls.astype(jnp.bfloat16), w1[:H], preferred_element_type=jnp.float32)
          + jnp.dot(x_feat.astype(jnp.bfloat16), w1[H:], preferred_element_type=jnp.float32)
          + p["b1"][None, :])
    h1 = jnp.maximum(h1, 0.0)
    h2 = jnp.dot(h1.astype(jnp.bfloat16), w2,
                 preferred_element_type=jnp.float32) + p["b2"][None, :]
    h2 = jnp.maximum(h2, 0.0)
    return jnp.dot(h2.astype(jnp.bfloat16), wc.T,
                   preferred_element_type=jnp.float32) + p["bc"][None, :]


if __name__ == "__main__":
    key = jax.random.PRNGKey(0)
    k_h, k_f, k_p, k_h2, k_f2 = jax.random.split(key, 5)

    # small shapes consistent with the module's forward
    batch, seq, bert_hidden = 8, 8, 32
    n_features = 8
    input_size = bert_hidden + n_features        # concat(CLS vector, input_features)
    hidden_size_1, hidden_size_2 = 64, 32

    hidden_state = jax.random.normal(k_h, (batch, seq, bert_hidden), jnp.float32)
    input_features = jax.random.normal(k_f, (batch, n_features), jnp.float32)
    params = init_ffnn_params(k_p, input_size, hidden_size_1, hidden_size_2)

    (logits,) = distilbert_dual_classifier_forward(hidden_state, input_features, params)
    logits = jax.block_until_ready(logits)
    assert logits.shape == (batch, 2)

    ref = ffnn_dual_reference(hidden_state[:, 0], input_features, params)
    err = float(jnp.max(jnp.abs(logits - ref)))
    assert jnp.allclose(logits, ref, atol=1e-3, rtol=1e-3), err

    # ragged, odd-sized batch + forced multi-step "parallel" grid (tb=128, 3 steps,
    # pad 304 -> 384): exercises padding, pipelining and the lane-dense tiled store.
    b2 = 300
    hs2 = jax.random.normal(k_h2, (b2, seq, bert_hidden), jnp.float32)
    feat2 = jax.random.normal(k_f2, (b2, n_features), jnp.float32)
    out2 = jax.block_until_ready(
        ffnn_dual_pooled_forward(hs2[:, 0], feat2, params, max_block_batch=128))
    ref2 = ffnn_dual_reference(hs2[:, 0], feat2, params)
    err2 = float(jnp.max(jnp.abs(out2 - ref2)))
    assert out2.shape == (b2, 2)
    assert jnp.allclose(out2, ref2, atol=1e-3, rtol=1e-3), err2

    print("KERNEL_OK")
</pallas_src>

<mosaic_0001>
module attributes {stable_mosaic.version = 11 : i64} {
  func.func @ffnn_dual_kernel(%arg0: i32, %arg1: memref<8x32xf32, #tpu.memory_space<vmem>>, %arg2: memref<8x8xf32, #tpu.memory_space<vmem>>, %arg3: memref<32x64xbf16, #tpu.memory_space<vmem>>, %arg4: memref<8x64xbf16, #tpu.memory_space<vmem>>, %arg5: memref<1x64xf32, #tpu.memory_space<vmem>>, %arg6: memref<64x32xbf16, #tpu.memory_space<vmem>>, %arg7: memref<1x32xf32, #tpu.memory_space<vmem>>, %arg8: memref<2x32xbf16, #tpu.memory_space<vmem>>, %arg9: memref<2x1xf32, #tpu.memory_space<vmem>>, %arg10: memref<2x8xf32, #tpu.memory_space<vmem>>) attributes {dimension_semantics = [#tpu.dimension_semantics<parallel>], iteration_bounds = array<i64: 1>, scalar_prefetch = 0 : i64, scratch_operands = 0 : i64, tpu.core_type = #tpu.core_type<tc>, window_params = [{transform_indices = @transform_0, window_bounds = array<i64: 8, 32>}, {transform_indices = @transform_1, window_bounds = array<i64: 8, 8>}, {pipeline_mode = #tpu.pipeline_mode<synchronous>, transform_indices = @transform_2, window_bounds = array<i64: 32, 64>}, {pipeline_mode = #tpu.pipeline_mode<synchronous>, transform_indices = @transform_3, window_bounds = array<i64: 8, 64>}, {pipeline_mode = #tpu.pipeline_mode<synchronous>, transform_indices = @transform_4, window_bounds = array<i64: 1, 64>}, {pipeline_mode = #tpu.pipeline_mode<synchronous>, transform_indices = @transform_5, window_bounds = array<i64: 64, 32>}, {pipeline_mode = #tpu.pipeline_mode<synchronous>, transform_indices = @transform_6, window_bounds = array<i64: 1, 32>}, {pipeline_mode = #tpu.pipeline_mode<synchronous>, transform_indices = @transform_7, window_bounds = array<i64: 2, 32>}, {pipeline_mode = #tpu.pipeline_mode<synchronous>, transform_indices = @transform_8, window_bounds = array<i64: 2, 1>}, {transform_indices = @transform_9, window_bounds = array<i64: 2, 8>}]} {
    %c0 = arith.constant 0 : index
    %c0_0 = arith.constant 0 : index
    %0 = vector.load %arg1[%c0, %c0_0] : memref<8x32xf32, #tpu.memory_space<vmem>>, vector<8x32xf32>
    %1 = arith.truncf %0 : vector<8x32xf32> to vector<8x32xbf16>
    %c0_1 = arith.constant 0 : index
    %c0_2 = arith.constant 0 : index
    %2 = vector.load %arg2[%c0_1, %c0_2] : memref<8x8xf32, #tpu.memory_space<vmem>>, vector<8x8xf32>
    %3 = arith.truncf %2 : vector<8x8xf32> to vector<8x8xbf16>
    %c0_3 = arith.constant 0 : index
    %c0_4 = arith.constant 0 : index
    %4 = vector.load %arg3[%c0_3, %c0_4] : memref<32x64xbf16, #tpu.memory_space<vmem>>, vector<32x64xbf16>
    %cst = arith.constant dense<0.000000e+00> : vector<8x64xf32>
    %5 = tpu.matmul %1, %4, %cst {dimension_numbers = #tpu.dot_dimension_numbers<[1], [0], [0], [1], [0, 0, 1, 1], [], []>} : vector<8x32xbf16>, vector<32x64xbf16>, vector<8x64xf32> -> vector<8x64xf32>
    %c0_5 = arith.constant 0 : index
    %c0_6 = arith.constant 0 : index
    %6 = vector.load %arg4[%c0_5, %c0_6] : memref<8x64xbf16, #tpu.memory_space<vmem>>, vector<8x64xbf16>
    %cst_7 = arith.constant dense<0.000000e+00> : vector<8x64xf32>
    %7 = tpu.matmul %3, %6, %cst_7 {dimension_numbers = #tpu.dot_dimension_numbers<[1], [0], [0], [1], [0, 0, 1, 1], [], []>} : vector<8x8xbf16>, vector<8x64xbf16>, vector<8x64xf32> -> vector<8x64xf32>
    %8 = arith.addf %5, %7 : vector<8x64xf32>
    %c0_8 = arith.constant 0 : index
    %c0_9 = arith.constant 0 : index
    %9 = vector.load %arg5[%c0_8, %c0_9] : memref<1x64xf32, #tpu.memory_space<vmem>>, vector<1x64xf32>
    %10 = vector.broadcast %9 : vector<1x64xf32> to vector<8x64xf32>
    %11 = arith.addf %8, %10 : vector<8x64xf32>
    %cst_10 = arith.constant 0.000000e+00 : f32
    %12 = vector.broadcast %cst_10 : f32 to vector<8x64xf32>
    %13 = arith.maximumf %11, %12 : vector<8x64xf32>
    %14 = arith.truncf %13 : vector<8x64xf32> to vector<8x64xbf16>
    %c0_11 = arith.constant 0 : index
    %c0_12 = arith.constant 0 : index
    %15 = vector.load %arg6[%c0_11, %c0_12] : memref<64x32xbf16, #tpu.memory_space<vmem>>, vector<64x32xbf16>
    %cst_13 = arith.constant dense<0.000000e+00> : vector<8x32xf32>
    %16 = tpu.matmul %14, %15, %cst_13 {dimension_numbers = #tpu.dot_dimension_numbers<[1], [0], [0], [1], [0, 0, 1, 1], [], []>} : vector<8x64xbf16>, vector<64x32xbf16>, vector<8x32xf32> -> vector<8x32xf32>
    %c0_14 = arith.constant 0 : index
    %c0_15 = arith.constant 0 : index
    %17 = vector.load %arg7[%c0_14, %c0_15] : memref<1x32xf32, #tpu.memory_space<vmem>>, vector<1x32xf32>
    %18 = vector.broadcast %17 : vector<1x32xf32> to vector<8x32xf32>
    %19 = arith.addf %16, %18 : vector<8x32xf32>
    %cst_16 = arith.constant 0.000000e+00 : f32
    %20 = vector.broadcast %cst_16 : f32 to vector<8x32xf32>
    %21 = arith.maximumf %19, %20 : vector<8x32xf32>
    %c0_17 = arith.constant 0 : index
    %c0_18 = arith.constant 0 : index
    %22 = vector.load %arg8[%c0_17, %c0_18] : memref<2x32xbf16, #tpu.memory_space<vmem>>, vector<2x32xbf16>
    %23 = arith.truncf %21 : vector<8x32xf32> to vector<8x32xbf16>
    %cst_19 = arith.constant dense<0.000000e+00> : vector<2x8xf32>
    %24 = tpu.matmul %22, %23, %cst_19 {dimension_numbers = #tpu.dot_dimension_numbers<[1], [1], [0], [0], [0, 0, 1, 0], [], []>} : vector<2x32xbf16>, vector<8x32xbf16>, vector<2x8xf32> -> vector<2x8xf32>
    %c0_20 = arith.constant 0 : index
    %c0_21 = arith.constant 0 : index
    %25 = vector.load %arg9[%c0_20, %c0_21] : memref<2x1xf32, #tpu.memory_space<vmem>>, vector<2x1xf32>
    %26 = vector.broadcast %25 : vector<2x1xf32> to vector<2x8xf32>
    %27 = arith.addf %24, %26 : vector<2x8xf32>
    %c0_22 = arith.constant 0 : index
    %c0_23 = arith.constant 0 : index
    %28 = vector.load %arg10[%c0_22, %c0_23] : memref<2x8xf32, #tpu.memory_space<vmem>>, vector<2x8xf32>
    tpu.vector_store %arg10[%c0_22, %c0_23], %27 {strides = array<i32>} : memref<2x8xf32, #tpu.memory_space<vmem>>, vector<2x8xf32>,
    return
  }
  func.func @transform_0(%arg0: i32) -> (i32, i32) {
    %c0_i32 = arith.constant 0 : i32
    %c0_i32_0 = arith.constant 0 : i32
    return %arg0, %c0_i32 : i32, i32
  }
  func.func @transform_1(%arg0: i32) -> (i32, i32) {
    %c0_i32 = arith.constant 0 : i32
    %c0_i32_0 = arith.constant 0 : i32
    return %arg0, %c0_i32 : i32, i32
  }
  func.func @transform_2(%arg0: i32) -> (i32, i32) {
    %c0_i32 = arith.constant 0 : i32
    %c0_i32_0 = arith.constant 0 : i32
    %c0_i32_1 = arith.constant 0 : i32
    return %c0_i32, %c0_i32_0 : i32, i32
  }
  func.func @transform_3(%arg0: i32) -> (i32, i32) {
    %c0_i32 = arith.constant 0 : i32
    %c0_i32_0 = arith.constant 0 : i32
    %c0_i32_1 = arith.constant 0 : i32
    return %c0_i32, %c0_i32_0 : i32, i32
  }
  func.func @transform_4(%arg0: i32) -> (i32, i32) {
    %c0_i32 = arith.constant 0 : i32
    %c0_i32_0 = arith.constant 0 : i32
    %c0_i32_1 = arith.constant 0 : i32
    return %c0_i32, %c0_i32_0 : i32, i32
  }
  func.func @transform_5(%arg0: i32) -> (i32, i32) {
    %c0_i32 = arith.constant 0 : i32
    %c0_i32_0 = arith.constant 0 : i32
    %c0_i32_1 = arith.constant 0 : i32
    return %c0_i32, %c0_i32_0 : i32, i32
  }
  func.func @transform_6(%arg0: i32) -> (i32, i32) {
    %c0_i32 = arith.constant 0 : i32
    %c0_i32_0 = arith.constant 0 : i32
    %c0_i32_1 = arith.constant 0 : i32
    return %c0_i32, %c0_i32_0 : i32, i32
  }
  func.func @transform_7(%arg0: i32) -> (i32, i32) {
    %c0_i32 = arith.constant 0 : i32
    %c0_i32_0 = arith.constant 0 : i32
    %c0_i32_1 = arith.constant 0 : i32
    return %c0_i32, %c0_i32_0 : i32, i32
  }
  func.func @transform_8(%arg0: i32) -> (i32, i32) {
    %c0_i32 = arith.constant 0 : i32
    %c0_i32_0 = arith.constant 0 : i32
    %c0_i32_1 = arith.constant 0 : i32
    return %c0_i32, %c0_i32_0 : i32, i32
  }
  func.func @transform_9(%arg0: i32) -> (i32, i32) {
    %c0_i32 = arith.constant 0 : i32
    %c0_i32_0 = arith.constant 0 : i32
    return %c0_i32, %arg0 : i32, i32
  }
}

</mosaic_0001>

<bundles_post_ra>
// kernel: tpu_custom_call.1
= control target key start
LH: loop header
LB: loop body
LE: loop exit
PB: predicated region body
PF: predicated region fallthrough
CT: control target
= control target key end

     0   :  { %v402_v1 = vmov 0.0   ;;  %vm47_vm0 = vcmask 1043456   ;;  %vm403_vm1 = vmmov 0   ;;  %vm43_vm2 = vcmask 64512   ;;  %s514_s0 = inlined_call_operand.vmem [shape: f32[8,32], index: 0, kind: input, shape index: {}]   ;;  %s515_s1 = inlined_call_operand.vmem [shape: f32[8,8], index: 1, kind: input, shape index: {}]   ;;  %s516_s2 = inlined_call_operand.vmem [shape: bf16[32,64], index: 2, kind: input, shape index: {}]   ;;  %s517_s3 = inlined_call_operand.vmem [shape: bf16[8,64], index: 3, kind: input, shape index: {}]   ;;  %s518_s4 = inlined_call_operand.vmem [shape: f32[1,64], index: 4, kind: input, shape index: {}]   ;;  %s519_s5 = inlined_call_operand.vmem [shape: bf16[64,32], index: 5, kind: input, shape index: {}]   ;;  %s520_s6 = inlined_call_operand.vmem [shape: f32[1,32], index: 6, kind: input, shape index: {}]   ;;  %s521_s7 = inlined_call_operand.vmem [shape: bf16[2,32], index: 7, kind: input, shape index: {}]   ;;  %s522_s8 = inlined_call_operand.vmem [shape: f32[2,1], index: 8, kind: input, shape index: {}]   ;;  %s523_s9 = inlined_call_operand.hbm [shape: f32[2,8], index: 9, kind: output, shape index: {}]  }
   0x1   :  { %v372_v0 = vld [vmem:[%s516_s2] sm:$0xff]   ;;  %341 = vmatprep.subr.bf16.mxu1 %v402_v1  ;;  %335 = vmatprep.subr.bf16.mxu0 %v402_v1  ;;  %v373_v6 = vld [vmem:[%s516_s2 + $0x8] sm:$0xff]   ;;  %vm103_vm3 = vcmask 261120  }
   0x2   :  { %v42_v2 = vld [vmem:[%s517_s3] sm:$0xf]  ;;  %342 = vmatpush3.bf16.msra.mxu1 %v372_v0  ;;  %337 = vmatprep.mubr.msk.bf16.mxu0 %vm403_vm1, %v402_v1 }
   0x3   :  { %v36_v3 = vld [vmem:[%s515_s1] sm:$0xff]  ;;  %v49_v4 = vsel %vm47_vm0, %v42_v2, 0  ;;  %343 = vmatprep.subr.bf16.mxu1 %v402_v1  ;;  %345 = vmatprep.mubr.msk.bf16.mxu1 %vm403_vm1, %v402_v1 }
   0x4   :  { %v37_v5 = vpack.c.bf16 %v36_v3, %v36_v3  ;;  %336 = vmatpush3.bf16.msra.mxu0 %v49_v4  ;;  %v34_v7 = vld [vmem:[%s514_s0] sm:$0xff] }
   0x5   :  { %349 = vmatprep.subr.bf16.mxu0 %v402_v1  ;;  %v374_v8 = vld [vmem:[%s519_s5] sm:$0xff]   ;;  %v35_v9 = vpack.c.bf16 %v34_v7, %v34_v7 }
   0x6   :  { %344 = vmatpush3.bf16.msra.mxu1 %v373_v6 }
   0x7   :  { %338 = vmatmul.mubr.msk.bf16.vlgmr.msra.gmra.mrb[0].mxu0 %vm43_vm2, %v37_v5 }
   0x8   :  { %14 = vsyncpa [#allocation3], 0  ;;  %350 = vmatpush3.bf16.msra.mxu0 %v374_v8  ;;  %357 = vmatprep.mubr.msk.bf16.mxu0 %vm403_vm1, %v402_v1  ;;  %v375_v10 = vld [vmem:[%s519_s5 + $0x8] sm:$0xff]   ;;  %v376_v11 = vld [vmem:[%s519_s5 + $0x10] sm:$0xff]   ;;  %vm196_vm4 = vcmask 523264   ;;  %v404_v27 = vmov 0  }
   0x9   :  { %351 = vmatprep.subr.bf16.mxu0 %v402_v1  ;;  %361 = vmatprep.subr.bf16.mxu1 %v402_v1  ;;  %v377_v12 = vld [vmem:[%s519_s5 + $0x18] sm:$0xff]   ;;  %v315_v18 = vld [vmem:[%s518_s4] ss:$0 sm:$0xff]  ;;  %vm295_vm5 = vcmask 58368  }
   0xa   :  { %346 = vmatmul.mubr.msk.bf16.vlgmr.msra.gmra.mrb[0].mxu1 %vm103_vm3, %v35_v9  ;;  %v243_v26 = vld [vmem:[%s522_s8] sm:$0x3]  ;;  %371 = vset.pattern.permute.xlu0 %v404_v27  ;;  %s405_s8 = smov [#allocation2]  }
   0xb   :  { %363 = vmatprep.mubr.msk.bf16.mxu1 %vm403_vm1, %v402_v1  ;;  %246 = vperm.xlu0 %371, %v243_v26   ;;  %v316_v28 = vld [vmem:[%s520_s6] ss:$0 sm:$0xff]  ;;  %s303_s29 = sshll.u32 %s405_s8, 4  ;;  %s304_s29 = int_to_ptr.vmem [resolvable:$true] %s303_s29 }
   0xc   :  { %352 = vmatpush3.bf16.msra.mxu0 %v375_v10  ;;  %v241_v37 = vld [vmem:[%s521_s7] sm:$0x1]  ;;  %s378_s6 = scalar_lea.vmem %s304_s29, 32  ;;  %p383_p1 = scmp.lt.s32.totalorder %s304_s29, %s304_s29 }
   0xd   :  { %353 = vmatprep.subr.bf16.mxu0 %v402_v1  ;;  %p379_p0 = scmp.ne.s32.totalorder %s304_s29, %s378_s6  ;;  %p384_p2 = scmp.lt.s32.totalorder %s378_s6, %s378_s6 }
   0xf   :  { %p385_p3 = por %p384_p2, %p383_p1 }
  0x10   :  { %354 = vmatpush3.bf16.msra.mxu0 %v376_v11 }
  0x11   :  { %355 = vmatprep.subr.bf16.mxu0 %v402_v1  ;;  %p386_p4 = pnand %p385_p3, %p379_p0 }
  0x14   :  { %356 = vmatpush3.bf16.msra.mxu0 %v377_v12 }
  0x8a   :  { %v247_v38 = vpop.permute.xlu0 %246 }
  0xda   :  { %v85_v13 = vpop.f32.mrb[0].mxu0 }
  0xdb   :  { %v339_v14 = vpop.f32.mrb[1].mxu0 }
  0xdc   :  { %v88_v15 = vpop.f32.mrb[2].mxu0 }
  0xdd   :  { %v340_v16 = vpop.f32.mrb[3].mxu0  ;;  %v141_v17 = vpop.f32.mrb[0].mxu1 }
  0xde   :  { %v142_v19 = vadd.f32 %v141_v17, %v85_v13  ;;  %v347_v20 = vpop.f32.mrb[1].mxu1 }
  0xdf   :  { %v144_v21 = vpop.f32.mrb[2].mxu1 }
  0xe0   :  { %v154_v22 = vadd.f32 %v315_v18, %v142_v19  ;;  %v348_v23 = vpop.f32.mrb[3].mxu1 }
  0xe2   :  { %v155_v24 = vmax.f32 %v154_v22, 0.0 }
  0xe4   :  { %v156_v25 = vpack.c.bf16 %v155_v24, %v155_v24 }
  0xe6   :  { %358 = vmatmul.mubr.msk.bf16.vlgmr.msra.gmra.mrb[4].mxu0 %vm196_vm4, %v156_v25 }
 0x1b9   :  { %v234_v29 = vpop.f32.mrb[4].mxu0 }
 0x1ba   :  { %v235_v30 = vadd.f32 %v316_v28, %v234_v29  ;;  %v359_v31 = vpop.f32.mrb[5].mxu0 }
 0x1bb   :  { %v237_v32 = vpop.f32.mrb[6].mxu0 }
 0x1bc   :  { %v240_v33 = vmax.f32 %v235_v30, 0.0  ;;  %v360_v34 = vpop.f32.mrb[7].mxu0 }
 0x1be   :  { %v242_v35 = vpack.c.bf16 %v240_v33, %v240_v33 }
 0x1c0   :  { %v253_v36 = vsel %vm103_vm3, %v242_v35, 0 }
 0x1c1   :  { %362 = vmatpush3.bf16.xpose.msra.mxu1 %v253_v36 }
 0x1c8   :  { %364 = vmatmul.mubr.msk.bf16.vlgmr.msra.gmra.mrb[4].mxu1 %vm103_vm3, %v241_v37 }
 0x29b   :  { %v289_v39 = vpop.f32.mrb[4].mxu1 }
 0x29c   :  { %v290_v40 = vadd.f32 %v289_v39, %v247_v38  ;;  %v365_v41 = vpop.f32.mrb[5].mxu1 }
 0x29d   :  { %v292_v42 = vpop.f32.mrb[6].mxu1 }
 0x29e   :  { %v366_v43 = vpop.f32.mrb[7].mxu1  ;;  %296 = vst.msk [vmem:[#allocation2] sm:$0x3] %vm295_vm5, %v290_v40 }
 0x29f   :  { %389 = shalt.err (!%p386_p4)
}
 0x2a0   :  { %s390_s10 = scalar_lea.hbm %s523_s9, 32 }
 0x2a1   :  { %p391_p5 = scmp.ne.s32.totalorder %s523_s9, %s390_s10  ;;  %p394_p6 = scmp.lt.u32.totalorder %s390_s10, %s523_s9 }
 0x2a3   :  { %p396_p7 = pnand %p394_p6, %p391_p5 }
 0x2a5   :  { %399 = shalt.err (!%p396_p7)
}
 0x2a6   :  { %306 = dma.vmem_to_hbm [thread:$0]  %s304_s29, 32, %s523_s9, [#allocation3]  }
 0x2a7   :  { %400 = dma.done.wait [#allocation3], 32  }
 0x2a8   :  { %401 = vsyncadd [#allocation3], 4294967264 }
 0x2a9   :  { %310 = vsyncpa [#allocation3], 1 }

</bundles_post_ra>
